<compile_context>
chip_gen: v6e
topology: v6e:2x2x1
jax: 0.10.0
libtpu: 0.0.40
codegen_flags: <defaults>
</compile_context>

<pallas_src>
import functools
import math

import jax
import jax.numpy as jnp
from jax import lax
from jax.experimental import pallas as pl
from jax.experimental.pallas import tpu as pltpu


def _rank_attention_kernel(p_ref, qt_ref, v_ref, o_ref, *, rank):
    """Fused scores -> softmax -> context for one (batch, query-tile) step."""
    p = p_ref[0]        # (tq, r) f32, query-side factor (scale pre-folded)
    qt = qt_ref[0]      # (r, S)  f32, key-side factor, lane-dense
    value = v_ref[0]    # (S, H)  bf16, hoisted value projection

    if rank <= 8:
        # Tiny-rank contraction on the VPU as broadcast outer products; a
        # K=r MXU matmul would leave the systolic array idle.
        scores = p[:, 0:1] * qt[0:1, :]                       # (tq, S) f32
        for ri in range(1, rank):
            scores = scores + p[:, ri:ri + 1] * qt[ri:ri + 1, :]
    else:
        scores = lax.dot_general(
            p, qt, dimension_numbers=(((1,), (0,)), ((), ())),
            preferred_element_type=jnp.float32)               # (tq, S) f32

    # Numerically-stable softmax in f32; EUP approx reciprocal for the denom.
    mx = jnp.max(scores, axis=-1, keepdims=True)
    e = jnp.exp(scores - mx)
    probs = e * pl.reciprocal(jnp.sum(e, axis=-1, keepdims=True), approx=True)

    # TODO(synk): nn.Dropout is identity in eval mode; training-mode dropout
    # (pltpu.prng_*) and attention_mask/head_mask paths intentionally omitted.

    # context = probs @ value  (bf16 MXU operands, f32 accumulation)
    ctx = jnp.dot(probs.astype(jnp.bfloat16), value,
                  preferred_element_type=jnp.float32)         # (tq, H)
    o_ref[0] = ctx.astype(o_ref.dtype)


def self_attention_forward(hidden_states, U, V, Wv, bv, num_heads, *, tq=None):
    """Pallas implementation of SelfAttention.forward (mask/head_mask=None)."""
    B, S, H = hidden_states.shape
    head_size = H // num_heads
    r = U.shape[-1]
    scale = 1.0 / math.sqrt(head_size)
    f32 = jnp.float32

    x32 = hidden_states.astype(f32)

    # Fold the "+1" column of X = [hidden, 1] into bias rows, and fold the
    # 1/sqrt(head_size) scale into the U factor (constant fold, no runtime mul
    # over the (tq, S) scores tile in-kernel).
    u_w = (U[:H, :] * scale).astype(f32)     # (H, r)
    u_b = (U[H, :] * scale).astype(f32)      # (r,)
    v_w = V[:, :H].T.astype(f32)             # (H, r)
    v_b = V[:, H].astype(f32)                # (r,)

    # Hoisted once-per-batch GEMMs (were redone per query tile before):
    p = x32 @ u_w + u_b                                   # (B, S, r) query-side factor
    q = x32 @ v_w + v_b                                   # (B, S, r) key-side factor
    qt = jnp.swapaxes(q, 1, 2)                            # (B, r, S) lane-dense keys
    value = (x32 @ Wv.T.astype(f32) + bv.astype(f32)).astype(jnp.bfloat16)  # (B, S, H)

    # ---- Generation-aware VMEM limit (leave headroom for compiler scratch) --
    try:
        vmem_cap = int(pltpu.get_tpu_info().vmem_capacity_bytes)
    except Exception:  # pragma: no cover - conservative fallback
        vmem_cap = 128 * 1024 * 1024
    # v7x (64 MiB phys) -> ~48 MiB requested; v5e/v6e (128 MiB) -> ~100 MiB.
    vmem_limit = int(min(max(vmem_cap - 16 * 1024 * 1024, 32 * 1024 * 1024),
                         100 * 1024 * 1024))

    # ---- Query-tile selection: largest legal divisor of S fitting the budget.
    out_itemsize = jnp.dtype(hidden_states.dtype).itemsize
    # Per-step residency (rough): value(bf16) + q^T(f32) blocks, double-buffered
    fixed_bytes = 2 * S * H * 2 + 2 * r * S * 4
    # ... plus, per query row: scores/e/probs intermediates, out/p blocks, ctx.
    per_tq_bytes = (3 * S * 4 + S * 2) + 2 * (H * out_itemsize + r * 4) + H * 4
    budget = int(0.75 * vmem_limit)

    if tq is None:
        cands = [d for d in range(S, 0, -1)
                 if S % d == 0 and (d % 8 == 0 or d == S)]
        fitting = [d for d in cands if fixed_bytes + d * per_tq_bytes <= budget]
        # Largest fitting tile amortizes the ~0.35us/step pipeline overhead.
        tq = fitting[0] if fitting else cands[-1]
        # TODO(synk): for ragged S with no small legal divisor, a cdiv grid +
        # masked epilogue (or flash-style key tiling) would bound VMEM further.
    else:
        if S % tq != 0:
            raise ValueError(f"tq={tq} must divide S={S}")
        if tq % 8 != 0 and tq != S:
            raise ValueError(f"tq={tq} must be a multiple of 8 (or equal S)")
    n_q = S // tq

    kernel = functools.partial(_rank_attention_kernel, rank=r)

    # Note: for H < 128 the output lane width is below a full vreg, so stores
    # are masked (vst.msk); irrelevant at realistic hidden sizes (H >= 128).
    out = pl.pallas_call(
        kernel,
        out_shape=jax.ShapeDtypeStruct((B, S, H), hidden_states.dtype),
        grid=(B, n_q),
        in_specs=[
            pl.BlockSpec((1, tq, r), lambda b, qi: (b, qi, 0)),  # p (query factor)
            pl.BlockSpec((1, r, S),  lambda b, qi: (b, 0, 0)),   # q^T (key factor)
            pl.BlockSpec((1, S, H),  lambda b, qi: (b, 0, 0)),   # value (bf16)
        ],
        out_specs=pl.BlockSpec((1, tq, H), lambda b, qi: (b, qi, 0)),
        compiler_params=pltpu.CompilerParams(
            dimension_semantics=("parallel", "parallel"),
            vmem_limit_bytes=vmem_limit),
    )(p, qt, value)
    return out


def _reference_forward(hidden, U, V, Wv, bv, num_heads):
    """Pure-JAX f32 reference matching the PyTorch module exactly."""
    H = hidden.shape[-1]
    head_size = H // num_heads
    value = hidden @ Wv.T + bv
    X = jnp.concatenate([hidden, jnp.ones_like(hidden[:, :, :1])], axis=-1)
    M = U @ V
    scores = jnp.einsum('bsk,kl,btl->bst', X, M, X) / math.sqrt(head_size)
    probs = jax.nn.softmax(scores, axis=-1)
    return probs @ value


if __name__ == "__main__":
    B, S, H = 2, 8, 32
    num_heads = 4
    rank = 1

    key = jax.random.PRNGKey(0)
    k_h, k_u, k_v, k_w, k_b = jax.random.split(key, 5)

    hidden = jax.random.normal(k_h, (B, S, H), dtype=jnp.float32)
    # Parameters (deterministic synthetic init; shapes match the module).
    U = jax.random.normal(k_u, (H + 1, rank), dtype=jnp.float32)
    V = jax.random.normal(k_v, (rank, H + 1), dtype=jnp.float32)
    Wv = 0.02 * jax.random.normal(k_w, (H, H), dtype=jnp.float32)  # Linear weight (out, in)
    bv = 0.02 * jax.random.normal(k_b, (H,), dtype=jnp.float32)    # Linear bias

    out = self_attention_forward(hidden, U, V, Wv, bv, num_heads)
    out = jax.block_until_ready(out)

    ref = _reference_forward(hidden, U, V, Wv, bv, num_heads)
    assert out.shape == (B, S, H)
    # Tolerance covers bf16 MXU operands + EUP approx reciprocal (~1e-3 rel).
    assert jnp.allclose(out, ref, atol=2e-2, rtol=2e-2), "mismatch vs reference"

    print("KERNEL_OK")
</pallas_src>

<mosaic_0001>
module attributes {stable_mosaic.version = 11 : i64} {
  func.func @_rank_attention_kernel(%arg0: i32, %arg1: i32, %arg2: memref<1x8x1xf32, #tpu.memory_space<vmem>>, %arg3: memref<1x1x8xf32, #tpu.memory_space<vmem>>, %arg4: memref<1x8x32xbf16, #tpu.memory_space<vmem>>, %arg5: memref<1x8x32xf32, #tpu.memory_space<vmem>>) attributes {dimension_semantics = [#tpu.dimension_semantics<parallel>, #tpu.dimension_semantics<parallel>], iteration_bounds = array<i64: 2, 1>, scalar_prefetch = 0 : i64, scratch_operands = 0 : i64, tpu.core_type = #tpu.core_type<tc>, window_params = [{transform_indices = @transform_0, window_bounds = array<i64: 1, 8, 1>}, {transform_indices = @transform_1, window_bounds = array<i64: 1, 1, 8>}, {transform_indices = @transform_2, window_bounds = array<i64: 1, 8, 32>}, {transform_indices = @transform_3, window_bounds = array<i64: 1, 8, 32>}]} {
    %c0 = arith.constant 0 : index
    %c0_0 = arith.constant 0 : index
    %c0_1 = arith.constant 0 : index
    %0 = vector.load %arg2[%c0, %c0_0, %c0_1] : memref<1x8x1xf32, #tpu.memory_space<vmem>>, vector<1x8x1xf32>
    %1 = vector.shape_cast %0 : vector<1x8x1xf32> to vector<8x1xf32>
    %c0_2 = arith.constant 0 : index
    %c0_3 = arith.constant 0 : index
    %c0_4 = arith.constant 0 : index
    %2 = vector.load %arg3[%c0_2, %c0_3, %c0_4] : memref<1x1x8xf32, #tpu.memory_space<vmem>>, vector<1x1x8xf32>
    %3 = vector.shape_cast %2 : vector<1x1x8xf32> to vector<1x8xf32>
    %c0_5 = arith.constant 0 : index
    %c0_6 = arith.constant 0 : index
    %c0_7 = arith.constant 0 : index
    %4 = vector.load %arg4[%c0_5, %c0_6, %c0_7] : memref<1x8x32xbf16, #tpu.memory_space<vmem>>, vector<1x8x32xbf16>
    %5 = vector.shape_cast %4 : vector<1x8x32xbf16> to vector<8x32xbf16>
    %6 = vector.broadcast %1 : vector<8x1xf32> to vector<8x8xf32>
    %7 = vector.broadcast %3 : vector<1x8xf32> to vector<8x8xf32>
    %8 = arith.mulf %6, %7 : vector<8x8xf32>
    %cst = arith.constant dense<0xFF800000> : vector<8xf32>
    %9 = vector.multi_reduction <maximumf>, %8, %cst [1] : vector<8x8xf32> to vector<8xf32>
    %10 = vector.shape_cast %9 : vector<8xf32> to vector<8x1xf32>
    %11 = vector.broadcast %10 : vector<8x1xf32> to vector<8x8xf32>
    %12 = arith.subf %8, %11 : vector<8x8xf32>
    %13 = math.exp %12 : vector<8x8xf32>
    %cst_8 = arith.constant dense<0.000000e+00> : vector<8xf32>
    %14 = vector.multi_reduction <add>, %13, %cst_8 [1] : vector<8x8xf32> to vector<8xf32>
    %15 = vector.shape_cast %14 : vector<8xf32> to vector<8x1xf32>
    %16 = tpu.reciprocal %15 {approx = true} : vector<8x1xf32> -> vector<8x1xf32>
    %17 = vector.broadcast %16 : vector<8x1xf32> to vector<8x8xf32>
    %18 = arith.mulf %13, %17 : vector<8x8xf32>
    %19 = arith.truncf %18 : vector<8x8xf32> to vector<8x8xbf16>
    %cst_9 = arith.constant dense<0.000000e+00> : vector<8x32xf32>
    %20 = tpu.matmul %19, %5, %cst_9 {dimension_numbers = #tpu.dot_dimension_numbers<[1], [0], [0], [1], [0, 0, 1, 1], [], []>} : vector<8x8xbf16>, vector<8x32xbf16>, vector<8x32xf32> -> vector<8x32xf32>
    %c0_10 = arith.constant 0 : index
    %c0_11 = arith.constant 0 : index
    %c0_12 = arith.constant 0 : index
    %21 = vector.load %arg5[%c0_10, %c0_11, %c0_12] : memref<1x8x32xf32, #tpu.memory_space<vmem>>, vector<1x8x32xf32>
    %22 = vector.shape_cast %21 : vector<1x8x32xf32> to vector<8x32xf32>
    %23 = vector.shape_cast %20 : vector<8x32xf32> to vector<1x8x32xf32>
    tpu.vector_store %arg5[%c0_10, %c0_11, %c0_12], %23 {strides = array<i32>} : memref<1x8x32xf32, #tpu.memory_space<vmem>>, vector<1x8x32xf32>,
    return
  }
  func.func @transform_0(%arg0: i32, %arg1: i32) -> (i32, i32, i32) {
    %c0_i32 = arith.constant 0 : i32
    %c0_i32_0 = arith.constant 0 : i32
    return %arg0, %arg1, %c0_i32 : i32, i32, i32
  }
  func.func @transform_1(%arg0: i32, %arg1: i32) -> (i32, i32, i32) {
    %c0_i32 = arith.constant 0 : i32
    %c0_i32_0 = arith.constant 0 : i32
    %c0_i32_1 = arith.constant 0 : i32
    return %arg0, %c0_i32, %c0_i32_0 : i32, i32, i32
  }
  func.func @transform_2(%arg0: i32, %arg1: i32) -> (i32, i32, i32) {
    %c0_i32 = arith.constant 0 : i32
    %c0_i32_0 = arith.constant 0 : i32
    %c0_i32_1 = arith.constant 0 : i32
    return %arg0, %c0_i32, %c0_i32_0 : i32, i32, i32
  }
  func.func @transform_3(%arg0: i32, %arg1: i32) -> (i32, i32, i32) {
    %c0_i32 = arith.constant 0 : i32
    %c0_i32_0 = arith.constant 0 : i32
    return %arg0, %arg1, %c0_i32 : i32, i32, i32
  }
}

</mosaic_0001>

<bundles_post_ra>
// kernel: tpu_custom_call.1
= control target key start
LH: loop header
LB: loop body
LE: loop exit
PB: predicated region body
PF: predicated region fallthrough
CT: control target
= control target key end

     0   :  { %8 = vsyncpa [#allocation3], 0  ;;  %s714_s0 = inlined_call_operand.vmem [shape: f32[2,8,1], index: 0, kind: input, shape index: {}]   ;;  %s715_s1 = inlined_call_operand.vmem [shape: f32[2,1,8], index: 1, kind: input, shape index: {}]   ;;  %s716_s2 = inlined_call_operand.vmem [shape: bf16[2,8,32], index: 2, kind: input, shape index: {}]   ;;  %s717_s3 = inlined_call_operand.hbm [shape: f32[2,8,32], index: 3, kind: output, shape index: {}]  }
   0x1   :  { %10 = vsyncpa [#allocation3 + $0x1], 0  ;;  %s594_s12 = smov 0   ;;  %s596_s13 = smov 0  }
   0x2   :  { %s598_s14 = smov 0   ;;  %s600_s15 = smov 0  }
   0x3   :  { %s602_s16 = smov 0   ;;  %s604_s17 = smov 0  }
   0x4 LB: > { %s407_s18 = sadd.s32 4294967295, %s568_s17   ;;  %s408_s19 = sadd.s32 4294967294, %s568_s17   ;;  %s568_s17 = sphi %s604_s17, %s16_s17   ;;  %s564_s16 = sphi %s602_s16, %s724_s16   ;;  %s560_s15 = sphi %s600_s15, %s723_s15   ;;  %s556_s14 = sphi %s598_s14, %s722_s14   ;;  %s552_s13 = sphi %s596_s13, %s721_s13   ;;  %s548_s12 = sphi %s594_s12, %s720_s12  }
   0x5   : > { %s28_s20 = sadd.s32 1, %s564_s16  ;;  %s117_s21 = sadd.s32 1, %s556_s14 }
   0x6   : > { %p30_p0 = scmp.ge.s32.totalorder %s28_s20, 2  ;;  %p127_p1 = scmp.ne.s32.totalorder %s556_s14, %s552_s13 }
   0x7   : > { %p128_p2 = scmp.eq.s32.totalorder %s407_s18, 1  ;;  %p133_p3 = scmp.ne.s32.totalorder %s552_s13, %s548_s12 }
   0x8   : > { %s726_s20 = smov (%p30_p0, %s28_s20), 0  ;;  %p134_p5 = scmp.eq.s32.totalorder %s408_s19, 1 }
   0x9   : > { %p634_p4 = por %p128_p2, %p127_p1  ;;  %s112_s23 = ssub.s32 %s564_s16, %s726_s20 }
   0xa   : > { %p411_p6 = scmp.ge.s32.totalorder %s568_s17, 1  ;;  %p115_p7 = scmp.eq.s32.totalorder %s112_s23, 0 }
   0xb   : > { %p641_p8 = por %p134_p5, %p133_p3  ;;  %p175_p9 = scmp.lt.s32.totalorder %s568_s17, 3 }
   0xc   : > { %s647_s25 = scalar_select %p115_p7, %s556_s14, %s117_s21  }
   0xd   : > { %p176_p10 = pnand %p411_p6, %p175_p9 }
   0xe   : > { %p208_p11 = scmp.lt.s32.totalorder (!%p176_p10), %s560_s15, 1  ;;  %s205_s11 = sand.u32 (!%p176_p10), 1, %s552_s13  }
   0xf   : > { %179 = sbr.rel (%p176_p10) target bundleno = 674 (0x2a2), region = 32  ;;  %s412_s18 = sshll.u32 (!%p176_p10), %s205_s11, 3 }
  0x10   : > { %s418_s19 = sshll.u32 (!%p176_p10), %s560_s15, 7  ;;  %s207_s21 = scalar_lea.vmem (!%p176_p10), [#allocation2], %s412_s18 }
  0x11   : > { %s315_s23 = sshll.u32 (!%p176_p10), %s207_s21, 4  ;;  %s668_s28 = scalar_lea.hbm (!%p176_p10), %s717_s3, %s418_s19  ;;  %s670_s23 = int_to_ptr.vmem [resolvable:$true] %s315_s23 }
  0x12   : > { %s301_s29 = scalar_lea.sflag (!%p176_p10), [#allocation3], %s205_s11 }
  0x14   : > { %v570_v0 = vmov 0   ;;  %s209_s26 = scalar_select %p208_p11, %s560_s15, 1  ;;  %vm238_vm0 = vcmask 64512   ;;  %vm254_vm1 = vcmask 1043456   ;;  %v571_v11 = vmov 0.0  }
  0x15   : > { %487 = vset.pattern.permute.xlu0 %v570_v0  ;;  %423 = vmatprep.subr.bf16.mxu0 %v571_v11  ;;  %vm572_vm2 = vmmov 0   ;;  %vm298_vm3 = vcmask 261120   ;;  %s573_s15 = smov [#allocation2]  }
  0x16   : > { %s413_s27 = sshll.u32 %s209_s26, 3  ;;  %s217_s6 = scalar_lea.vmem %s715_s1, %s209_s26  ;;  %425 = vmatprep.mubr.msk.bf16.mxu0 %vm572_vm2, %v571_v11 }
  0x17   : > { %s214_s30 = scalar_lea.vmem %s714_s0, %s413_s27  ;;  %v415_v2 = vld [vmem:[%s217_s6] ss:$0 sm:$0xff]  ;;  %s414_s7 = sshll.u32 %s209_s26, 2 }
  0x18   : > { %v223_v1 = vld [vmem:[%s214_s30] sm:$0xff]  ;;  %s221_s10 = scalar_lea.vmem %s716_s2, %s414_s7  ;;  %s492_s30 = scalar_lea.vmem %s670_s23, 128 }
  0x19   : > { %228 = vperm.xlu0 %487, %v223_v1   ;;  %v225_v12 = vld [vmem:[%s221_s10] sm:$0xf]  ;;  %p493_p12 = scmp.ne.s32.totalorder %s670_s23, %s492_s30  ;;  %s496_s4 = sshll.u32 %s573_s15, 4  ;;  %s497_s4 = int_to_ptr.vmem [resolvable:$false] %s496_s4 }
  0x1a   : > { %v256_v13 = vsel %vm254_vm1, %v225_v12, 0  ;;  %s498_s5 = scalar_lea.vmem %s497_s4, 256  ;;  %p499_p1 = scmp.lt.s32.totalorder %s670_s23, %s497_s4 }
  0x1b   : > { %424 = vmatpush3.bf16.msra.mxu0 %v256_v13  ;;  %p494_p13 = pnand %p493_p12, %p634_p4  ;;  %p500_p2 = scmp.lt.s32.totalorder %s498_s5, %s492_s30 }
  0x1d   : > { %p495_p0 = pneg %p494_p13  ;;  %p501_p3 = por %p500_p2, %p499_p1 }
  0x1f   : > { %p502_p5 = pnand %p501_p3, %p495_p0 }
  0x94   : > { %v229_v3 = vpop.permute.xlu0 %228 }
  0x95   : > { %v237_v4 = vmul.f32 %v415_v2, %v229_v3 }
  0x97   : > { %v239_v5 = vsel %vm238_vm0, %v237_v4, -inf }
  0x98   : > { %240 = vmax.xlane.f32.xlu0 %v239_v5 }
 0x121   : > { %v241_v6 = vpop.xlane.xlu0 %240 }
 0x122   : > { %v242_v7 = vsub.f32 %v237_v4, %v241_v6 }
 0x124   : > { %v243_v8 = vmul.f32 1.442695, %v242_v7 }
 0x126   : > { %488 = vpow2.f32 %v243_v8 }
 0x133   : > { %v489_v9 = vpop.eup %488 }
 0x134   : > { %v245_v10 = vsel %vm238_vm0, %v489_v9, 0.0 }
 0x135   : > { %246 = vadd.xlane.f32.xlu1 %v245_v10 }
 0x1be   : > { %v247_v14 = vpop.xlane.xlu1 %246 }
 0x1bf   : > { %490 = vrcp.f32 %v247_v14 }
 0x1cc   : > { %v491_v15 = vpop.eup %490 }
 0x1cd   : > { %v249_v16 = vmul.f32 %v491_v15, %v489_v9 }
 0x1cf   : > { %v250_v17 = vpack.c.bf16 %v249_v16, %v249_v16 }
 0x1d1   : > { %426 = vmatmul.mubr.msk.bf16.vlgmr.msra.gmra.mxu0 %vm238_vm0, %v250_v17 }
 0x291   : > { %v292_v18 = vpop.f32.mrf.mxu0 }
 0x292   : > { %299 = vst.msk [vmem:[%s207_s21] sm:$0xff] %vm298_vm3, %v292_v18 }
 0x293   : > { %v427_v19 = vpop.f32.mrf.mxu0 }
 0x294   : > { %505 = shalt.err (!%p502_p5)
}
 0x295   : > { %s506_s6 = scalar_lea.hbm %s668_s28, 128  ;;  %s510_s9 = scalar_lea.hbm %s717_s3, 256 }
 0x296   : > { %p507_p6 = scmp.ne.s32.totalorder %s668_s28, %s506_s6  ;;  %p511_p10 = scmp.lt.s32.totalorder %s668_s28, %s717_s3 }
 0x297   : > { %p512_p11 = scmp.lt.s32.totalorder %s510_s9, %s506_s6 }
 0x298   : > { %p508_p7 = pnand %p507_p6, %p634_p4 }
 0x299   : > { %p513_p12 = por %p512_p11, %p511_p10 }
 0x29a   : > { %p509_p9 = pneg %p508_p7 }
 0x29c   : > { %p514_p13 = pnand %p513_p12, %p509_p9 }
 0x29e   : > { %517 = shalt.err (!%p514_p13)
}
 0x29f   : > { %429 = dma.vmem_to_hbm [thread:$0]  (%p634_p4), %s670_s23, 128, %s668_s28, %s301_s29   ;;  %v295_v20 = vpop.f32.mrf.mxu0 }
 0x2a1   : > { %v428_v21 = vpop.f32.mrf.mxu0 }
 0x2a2 PF: > { %p435_p0 = scmp.ge.s32.totalorder %s568_s17, 2  ;;  %s327_s18 = sand.u32 1, %s548_s12  }
 0x2a3   : > { %s328_s19 = scalar_lea.sflag [#allocation3], %s327_s18 }
 0x2a4   : > { %p432_p1 = pnand %p435_p0, %p641_p8 }
 0x2a6   : > { %p433_p2 = pneg %p432_p1 }
 0x2a8   : > { %543 = dma.done.wait (%p433_p2), %s328_s19, 128  }
 0x2a9   : > { %545 = vsyncadd (%p433_p2), %s328_s19, 4294967168  ;;  %s16_s17 = sadd.s32 1, %s568_s17   ;;  %s720_s12 = smov %s552_s13 }
 0x2aa   : > { %p13_p3 = scmp.ge.s32.totalorder %s16_s17, 4   ;;  %s721_s13 = smov %s556_s14 }
 0x2ab   : > { %s722_s14 = smov %s647_s25  ;;  %s723_s15 = smov %s564_s16 }
 0x2ac   : > { %s724_s16 = smov %s726_s20  ;;  %15 = sbr.rel (!%p13_p3) target bundleno = 4 (0x4), region = 73 }
 0x2b1   :  { %333 = vsyncpa [#allocation3], 1 }
 0x2b2   :  { %335 = vsyncpa [#allocation3 + $0x1], 1 }

</bundles_post_ra>
